<compile_context>
chip_gen: v5e
topology: v5e:2x2
jax: 0.10.0
libtpu: 0.0.40
codegen_flags: <defaults>
</compile_context>

<pallas_src>
import math
import functools

import jax
import jax.numpy as jnp
from jax.experimental import pallas as pl
from jax.experimental.pallas import tpu as pltpu


def _round_up(x, m):
    return ((x + m - 1) // m) * m


def _vmem_budget_bytes():
    """Generation-aware scoped-VMEM budget (leave the compiler headroom)."""
    cap = 64 << 20  # conservative default == v7x per-TensorCore VMEM
    try:
        info = pltpu.get_tpu_info()
        cap = int(getattr(info, "vmem_capacity_bytes", cap))
    except Exception:
        pass
    # Use at most ~half of physical VMEM: 64 MiB on v5e/v6e, 32 MiB on v7x.
    return int(min(max(cap // 2, 16 << 20), 64 << 20))


def _per_model_matmul(x, w_ref, n_models, compute_dtype):
    """x: (tB, E, tI) value, w_ref: (E, tI, tO) ref -> (tB, E, tO) f32 value."""
    parts = []
    for e in range(n_models):           # static unroll; E is small
        xe = x[:, e, :]                  # (tB, tI)
        we = w_ref[e]                    # (tI, tO)
        if compute_dtype is not None:    # per-tile cast; no extra HBM pass
            xe = xe.astype(compute_dtype)
            we = we.astype(compute_dtype)
        parts.append(jnp.dot(xe, we, preferred_element_type=jnp.float32))
    return jnp.stack(parts, axis=1)      # (tB, E, tO)


def _einlinear_kernel_single_k(x_ref, w_ref, o_ref, *, n_models, compute_dtype):
    # nI == 1: no scratch accumulator, write the MXU result straight out.
    res = _per_model_matmul(x_ref[...], w_ref, n_models, compute_dtype)
    o_ref[...] = res.astype(o_ref.dtype)


def _einlinear_kernel_multi_k(x_ref, w_ref, o_ref, acc_ref, *, n_models,
                              compute_dtype):
    # acc_ref: (tB, E, tO) float32, persists across the reduction (k) axis.
    k = pl.program_id(2)

    @pl.when(k == 0)
    def _():
        acc_ref[...] = jnp.zeros_like(acc_ref)

    acc_ref[...] += _per_model_matmul(x_ref[...], w_ref, n_models, compute_dtype)

    @pl.when(k == pl.num_programs(2) - 1)
    def _():
        o_ref[...] = acc_ref[...].astype(o_ref.dtype)


def _choose_tiles(B, E, I, O, x_item, w_item, o_item, budget,
                  max_tb, max_to, max_ti):
    max_to = _round_up(max_to, 128)
    max_ti = _round_up(max_ti, 128)
    tB = min(B, max_tb)
    tI = I if I <= max_ti else max_ti        # full dim (any size) or 128-mult
    tO = O if O <= max_to else max_to

    def step_bytes(tb, ti, to):
        b = 2 * (tb * E * ti * x_item + E * ti * to * w_item + tb * E * to * o_item)
        if ti < I:                            # accumulator only on multi-k path
            b += tb * E * to * 4
        return b

    # Shrink until the double-buffered working set fits comfortably.
    while step_bytes(tB, tI, tO) > 0.8 * budget:
        if tB > 256:
            tB //= 2
        elif tI > 512:
            tI = max(512, _round_up(tI // 2, 128))
        elif tO > 256:
            tO = max(256, _round_up(tO // 2, 128))
        elif tB > 64:
            tB //= 2
        elif tI > 128:
            tI = max(128, _round_up(tI // 2, 128))
        elif tO > 128:
            tO = max(128, _round_up(tO // 2, 128))
        elif tB > 8:
            tB = max(8, tB // 2)
        else:
            # TODO(synk): also tile the n_models axis if E is ever so large
            # that a single (E, 128, 128) weight block does not fit in VMEM.
            break

    if tI >= I:
        tI = I
    if tO >= O:
        tO = O
    if tB >= B:
        tB = B
    return tB, tI, tO


def ein_linear_prepared(x, w_eio, *, compute_dtype=None, out_dtype=None,
                        max_tb=512, max_to=512, max_ti=2048):
    """EinLinear with the weight already stored MXU-natively as (E, I, O).

    x     : [B, E, I]
    w_eio : [E, I, O]
    returns [B, E, O]   (== einsum('eoi,bei->beo', weight, x))
    """
    B, E, I = x.shape
    E_w, I_w, O = w_eio.shape
    assert E == E_w and I == I_w
    out_dtype = out_dtype if out_dtype is not None else x.dtype

    budget = _vmem_budget_bytes()
    x_item = jnp.dtype(x.dtype).itemsize
    w_item = jnp.dtype(w_eio.dtype).itemsize
    o_item = jnp.dtype(out_dtype).itemsize
    tB, tI, tO = _choose_tiles(B, E, I, O, x_item, w_item, o_item, budget,
                               max_tb, max_to, max_ti)

    B_p, I_p, O_p = _round_up(B, tB), _round_up(I, tI), _round_up(O, tO)

    # Pad only when a dim is actually split into non-full tiles.  Zero padding
    # along I contributes 0 to the reduction; padded B rows / O columns are
    # sliced off below.
    if (B_p, I_p) != (B, I):
        x = jnp.pad(x, ((0, B_p - B), (0, 0), (0, I_p - I)))
    if (I_p, O_p) != (I, O):
        w_eio = jnp.pad(w_eio, ((0, 0), (0, I_p - I), (0, O_p - O)))

    nB, nO, nI = B_p // tB, O_p // tO, I_p // tI

    # Adaptive grid order: stream the LARGER of x / weight from HBM exactly
    # once; the smaller operand is the one that gets re-read.
    x_bytes = B_p * E * I_p * x_item
    w_bytes = E * I_p * O_p * w_item
    cost_b_outer = x_bytes * (nO if nI > 1 else 1) + w_bytes * nB
    cost_o_outer = x_bytes * nO + w_bytes * (nB if nI > 1 else 1)

    if cost_b_outer <= cost_o_outer:
        grid = (nB, nO, nI)
        x_map = lambda b, o, k: (b, 0, k)
        w_map = lambda b, o, k: (0, k, o)
        o_map = lambda b, o, k: (b, 0, o)
    else:
        grid = (nO, nB, nI)
        x_map = lambda o, b, k: (b, 0, k)
        w_map = lambda o, b, k: (0, k, o)
        o_map = lambda o, b, k: (b, 0, o)

    if nI == 1:
        kernel = functools.partial(_einlinear_kernel_single_k,
                                   n_models=E, compute_dtype=compute_dtype)
        scratch_shapes = []
    else:
        kernel = functools.partial(_einlinear_kernel_multi_k,
                                   n_models=E, compute_dtype=compute_dtype)
        scratch_shapes = [pltpu.VMEM((tB, E, tO), jnp.float32)]

    out = pl.pallas_call(
        kernel,
        out_shape=jax.ShapeDtypeStruct((B_p, E, O_p), out_dtype),
        grid_spec=pltpu.PrefetchScalarGridSpec(
            num_scalar_prefetch=0,
            grid=grid,
            in_specs=[
                pl.BlockSpec((tB, E, tI), x_map),   # activations, native layout
                pl.BlockSpec((E, tI, tO), w_map),   # weights, (I, O) per model
            ],
            out_specs=pl.BlockSpec((tB, E, tO), o_map),
            scratch_shapes=scratch_shapes,
        ),
        compiler_params=pltpu.CompilerParams(
            dimension_semantics=("parallel", "parallel", "arbitrary"),
            vmem_limit_bytes=budget,
        ),
    )(x, w_eio)

    if (B_p, O_p) != (B, O):
        out = out[:B, :, :O]
    return out


def ein_linear(x, weight, **kwargs):
    """PyTorch-layout EinLinear forward.

    x: [B, n_models, in_features], weight: [n_models, out_features, in_features]
    returns [B, n_models, out_features]

    The only wrapper-side data movement is the one-time weight transpose to
    (E, I, O); in real use store the weight pre-transposed (optionally bf16 at
    rest to halve weight HBM traffic) and call ein_linear_prepared directly.
    """
    w_eio = jnp.transpose(weight, (0, 2, 1))
    return ein_linear_prepared(x, w_eio, **kwargs)


def init_params(key, n_models, in_features, out_features, dtype=jnp.float32):
    # kaiming_uniform_(a=sqrt(5)) on [O, I] => U(-1/sqrt(fan_in), 1/sqrt(fan_in))
    bound = 1.0 / math.sqrt(in_features)
    return jax.random.uniform(
        key, (n_models, out_features, in_features),
        minval=-bound, maxval=bound, dtype=dtype,
    )


if __name__ == "__main__":
    key = jax.random.PRNGKey(0)

    # ---- small test at the module's natural scale ---------------------------
    k_w, k_x, key = jax.random.split(key, 3)
    B, n_models, in_features, out_features = 8, 4, 32, 16
    weight = init_params(k_w, n_models, in_features, out_features)
    x = jax.random.normal(k_x, (B, n_models, in_features), dtype=jnp.float32)

    out = jax.block_until_ready(ein_linear(x, weight))
    ref = jnp.einsum('eoi,bei->beo', weight, x)
    assert out.shape == (B, n_models, out_features)
    assert jnp.allclose(out, ref, atol=1e-3, rtol=1e-3)

    # bf16 MXU operands (cast per-tile inside the kernel), f32 accumulation.
    out_bf16 = jax.block_until_ready(
        ein_linear(x, weight, compute_dtype=jnp.bfloat16))
    assert jnp.allclose(out_bf16, ref, atol=3e-2, rtol=3e-2)

    # ---- force multi-tile path: accumulator, padding, grid-order selection --
    k_w2, k_x2, key = jax.random.split(key, 3)
    B2, E2, I2, O2 = 24, 3, 384, 160
    weight2 = init_params(k_w2, E2, I2, O2)
    x2 = jax.random.normal(k_x2, (B2, E2, I2), dtype=jnp.float32)

    out2 = jax.block_until_ready(
        ein_linear(x2, weight2, max_tb=16, max_to=128, max_ti=128))
    ref2 = jnp.einsum('eoi,bei->beo', weight2, x2)
    assert out2.shape == (B2, E2, O2)
    assert jnp.allclose(out2, ref2, atol=2e-2, rtol=2e-2)

    print("KERNEL_OK")
</pallas_src>

<mosaic_0001>
module attributes {stable_mosaic.version = 11 : i64} {
  func.func @_einlinear_kernel_single_k(%arg0: i32, %arg1: i32, %arg2: i32, %arg3: memref<8x4x32xf32, #tpu.memory_space<vmem>>, %arg4: memref<4x32x16xf32, #tpu.memory_space<vmem>>, %arg5: memref<8x4x16xf32, #tpu.memory_space<vmem>>) attributes {dimension_semantics = [#tpu.dimension_semantics<parallel>, #tpu.dimension_semantics<parallel>, #tpu.dimension_semantics<arbitrary>], iteration_bounds = array<i64: 1, 1, 1>, scalar_prefetch = 0 : i64, scratch_operands = 0 : i64, tpu.core_type = #tpu.core_type<tc>, window_params = [{transform_indices = @transform_0, window_bounds = array<i64: 8, 4, 32>}, {transform_indices = @transform_1, window_bounds = array<i64: 4, 32, 16>}, {transform_indices = @transform_2, window_bounds = array<i64: 8, 4, 16>}]} {
    %c0 = arith.constant 0 : index
    %c0_0 = arith.constant 0 : index
    %c0_1 = arith.constant 0 : index
    %0 = vector.load %arg3[%c0, %c0_0, %c0_1] : memref<8x4x32xf32, #tpu.memory_space<vmem>>, vector<8x4x32xf32>
    %1 = vector.extract_strided_slice %0 {offsets = [0, 0, 0], sizes = [8, 1, 32], strides = [1, 1, 1]} : vector<8x4x32xf32> to vector<8x1x32xf32>
    %2 = vector.shape_cast %1 : vector<8x1x32xf32> to vector<8x32xf32>
    %c0_2 = arith.constant 0 : index
    %c0_3 = arith.constant 0 : index
    %c0_4 = arith.constant 0 : index
    %3 = vector.load %arg4[%c0_2, %c0_3, %c0_4] : memref<4x32x16xf32, #tpu.memory_space<vmem>>, vector<1x32x16xf32>
    %4 = vector.shape_cast %3 : vector<1x32x16xf32> to vector<32x16xf32>
    %cst = arith.constant dense<0.000000e+00> : vector<8x16xf32>
    %5 = tpu.matmul %2, %4, %cst {dimension_numbers = #tpu.dot_dimension_numbers<[1], [0], [0], [1], [0, 0, 1, 1], [], []>} : vector<8x32xf32>, vector<32x16xf32>, vector<8x16xf32> -> vector<8x16xf32>
    %6 = vector.extract_strided_slice %0 {offsets = [0, 1, 0], sizes = [8, 1, 32], strides = [1, 1, 1]} : vector<8x4x32xf32> to vector<8x1x32xf32>
    %7 = vector.shape_cast %6 : vector<8x1x32xf32> to vector<8x32xf32>
    %c1 = arith.constant 1 : index
    %c0_5 = arith.constant 0 : index
    %c0_6 = arith.constant 0 : index
    %8 = vector.load %arg4[%c1, %c0_5, %c0_6] : memref<4x32x16xf32, #tpu.memory_space<vmem>>, vector<1x32x16xf32>
    %9 = vector.shape_cast %8 : vector<1x32x16xf32> to vector<32x16xf32>
    %cst_7 = arith.constant dense<0.000000e+00> : vector<8x16xf32>
    %10 = tpu.matmul %7, %9, %cst_7 {dimension_numbers = #tpu.dot_dimension_numbers<[1], [0], [0], [1], [0, 0, 1, 1], [], []>} : vector<8x32xf32>, vector<32x16xf32>, vector<8x16xf32> -> vector<8x16xf32>
    %11 = vector.extract_strided_slice %0 {offsets = [0, 2, 0], sizes = [8, 1, 32], strides = [1, 1, 1]} : vector<8x4x32xf32> to vector<8x1x32xf32>
    %12 = vector.shape_cast %11 : vector<8x1x32xf32> to vector<8x32xf32>
    %c2 = arith.constant 2 : index
    %c0_8 = arith.constant 0 : index
    %c0_9 = arith.constant 0 : index
    %13 = vector.load %arg4[%c2, %c0_8, %c0_9] : memref<4x32x16xf32, #tpu.memory_space<vmem>>, vector<1x32x16xf32>
    %14 = vector.shape_cast %13 : vector<1x32x16xf32> to vector<32x16xf32>
    %cst_10 = arith.constant dense<0.000000e+00> : vector<8x16xf32>
    %15 = tpu.matmul %12, %14, %cst_10 {dimension_numbers = #tpu.dot_dimension_numbers<[1], [0], [0], [1], [0, 0, 1, 1], [], []>} : vector<8x32xf32>, vector<32x16xf32>, vector<8x16xf32> -> vector<8x16xf32>
    %16 = vector.extract_strided_slice %0 {offsets = [0, 3, 0], sizes = [8, 1, 32], strides = [1, 1, 1]} : vector<8x4x32xf32> to vector<8x1x32xf32>
    %17 = vector.shape_cast %16 : vector<8x1x32xf32> to vector<8x32xf32>
    %c3 = arith.constant 3 : index
    %c0_11 = arith.constant 0 : index
    %c0_12 = arith.constant 0 : index
    %18 = vector.load %arg4[%c3, %c0_11, %c0_12] : memref<4x32x16xf32, #tpu.memory_space<vmem>>, vector<1x32x16xf32>
    %19 = vector.shape_cast %18 : vector<1x32x16xf32> to vector<32x16xf32>
    %cst_13 = arith.constant dense<0.000000e+00> : vector<8x16xf32>
    %20 = tpu.matmul %17, %19, %cst_13 {dimension_numbers = #tpu.dot_dimension_numbers<[1], [0], [0], [1], [0, 0, 1, 1], [], []>} : vector<8x32xf32>, vector<32x16xf32>, vector<8x16xf32> -> vector<8x16xf32>
    %21 = vector.shape_cast %5 : vector<8x16xf32> to vector<8x1x16xf32>
    %22 = vector.shape_cast %10 : vector<8x16xf32> to vector<8x1x16xf32>
    %23 = vector.shape_cast %15 : vector<8x16xf32> to vector<8x1x16xf32>
    %24 = vector.shape_cast %20 : vector<8x16xf32> to vector<8x1x16xf32>
    %25 = tpu.concatenate %21, %22, %23, %24 in 1 : vector<8x1x16xf32>, vector<8x1x16xf32>, vector<8x1x16xf32>, vector<8x1x16xf32> -> vector<8x4x16xf32>
    %c0_14 = arith.constant 0 : index
    %c0_15 = arith.constant 0 : index
    %c0_16 = arith.constant 0 : index
    %26 = vector.load %arg5[%c0_14, %c0_15, %c0_16] : memref<8x4x16xf32, #tpu.memory_space<vmem>>, vector<8x4x16xf32>
    tpu.vector_store %arg5[%c0_14, %c0_15, %c0_16], %25 {strides = array<i32>} : memref<8x4x16xf32, #tpu.memory_space<vmem>>, vector<8x4x16xf32>,
    return
  }
  func.func @transform_0(%arg0: i32, %arg1: i32, %arg2: i32) -> (i32, i32, i32) {
    %c0_i32 = arith.constant 0 : i32
    %c0_i32_0 = arith.constant 0 : i32
    return %arg0, %c0_i32, %arg2 : i32, i32, i32
  }
  func.func @transform_1(%arg0: i32, %arg1: i32, %arg2: i32) -> (i32, i32, i32) {
    %c0_i32 = arith.constant 0 : i32
    %c0_i32_0 = arith.constant 0 : i32
    return %c0_i32, %arg2, %arg1 : i32, i32, i32
  }
  func.func @transform_2(%arg0: i32, %arg1: i32, %arg2: i32) -> (i32, i32, i32) {
    %c0_i32 = arith.constant 0 : i32
    %c0_i32_0 = arith.constant 0 : i32
    return %arg0, %c0_i32, %arg1 : i32, i32, i32
  }
}

</mosaic_0001>

<bundles_post_ra>
// kernel: tpu_custom_call.1
= control target key start
LH: loop header
LB: loop body
LE: loop exit
PB: predicated region body
PF: predicated region fallthrough
CT: control target
= control target key end

     0   :  { %vm33_vm0 = vcmask 1041409   ;;  %vm36_vm1 = vcmask 1042434   ;;  %vm39_vm2 = vcmask 1043459   ;;  %vm42_vm3 = vcmask 1044484   ;;  %s590_s0 = inlined_call_operand.vmem [shape: f32[8,4,32], index: 0, kind: input, shape index: {}]   ;;  %s591_s1 = inlined_call_operand.vmem [shape: f32[4,32,16], index: 1, kind: input, shape index: {}]   ;;  %s592_s2 = inlined_call_operand.hbm [shape: f32[8,4,16], index: 2, kind: output, shape index: {}]  }
   0x1   :  { %v349_v0 = vld [vmem:[%s591_s1 + $0x58] sm:$0xff]  ;;  %v348_v2 = vld [vmem:[%s591_s1 + $0x50] sm:$0xff]  ;;  %v347_v4 = vld [vmem:[%s591_s1 + $0x48] sm:$0xff]  ;;  %vm45_vm4 = vcmask 1045509   ;;  %vm48_vm5 = vcmask 1046534   ;;  %vm51_vm6 = vcmask 1047559  }
   0x2   :  { %v354_v1 = vld [vmem:[%s591_s1 + $0x78] sm:$0xff]  ;;  %150 = vmatpush.msra.mxu2 %v349_v0  ;;  %v353_v3 = vld [vmem:[%s591_s1 + $0x70] sm:$0xff]  ;;  %v352_v6 = vld [vmem:[%s591_s1 + $0x68] sm:$0xff]  ;;  %vm53_vm7 = vcmask 261120  }
   0x3   :  { %191 = vmatpush.msra.mxu3 %v354_v1  ;;  %v344_v5 = vld [vmem:[%s591_s1 + $0x38] sm:$0xff]  ;;  %v346_v7 = vld [vmem:[%s591_s1 + $0x40] sm:$0xff]  ;;  %v343_v9 = vld [vmem:[%s591_s1 + $0x30] sm:$0xff] }
   0x4   :  { %109 = vmatpush.msra.mxu1 %v344_v5  ;;  %v23_v8 = vld [vmem:[%s591_s1 + $0x18] sm:$0xff]  ;;  %151 = vmatpush.msra.mxu2 %v348_v2  ;;  %v436_v10 = vld [vmem:[%s590_s0] sm:$0xf]  ;;  %v441_v11 = vld [vmem:[%s590_s0 + $0x4] sm:$0xf] }
   0x5   :  { %192 = vmatpush.msra.mxu3 %v353_v3  ;;  %68 = vmatpush.msra.mxu0 %v23_v8  ;;  %v446_v12 = vld [vmem:[%s590_s0 + $0x8] sm:$0xf]  ;;  %v451_v13 = vld [vmem:[%s590_s0 + $0xc] sm:$0xf]  ;;  %v456_v14 = vld [vmem:[%s590_s0 + $0x10] sm:$0xf] }
   0x6   :  { %110 = vmatpush.msra.mxu1 %v343_v9  ;;  %152 = vmatpush.msra.mxu2 %v347_v4  ;;  %v461_v15 = vld [vmem:[%s590_s0 + $0x14] sm:$0xf]  ;;  %v466_v16 = vld [vmem:[%s590_s0 + $0x18] sm:$0xf]  ;;  %v471_v17 = vld [vmem:[%s590_s0 + $0x1c] sm:$0xf] }
   0x7   :  { %193 = vmatpush.msra.mxu3 %v352_v6  ;;  %v122_v18 = vrot.slane %v436_v10, 2  ;;  %v123_v19 = vrot.slane %v441_v11, 1  ;;  %v126_v20 = vrot.slane %v451_v13, 7  ;;  %v128_v21 = vrot.slane %v456_v14, 6  ;;  %v351_v22 = vld [vmem:[%s591_s1 + $0x60] sm:$0xff]  ;;  %v22_v23 = vld [vmem:[%s591_s1 + $0x10] sm:$0xff] }
   0x8   :  { %153 = vmatpush.msra.mxu2 %v346_v7  ;;  %v130_v24 = vrot.slane %v461_v15, 5  ;;  %v132_v25 = vrot.slane %v466_v16, 4  ;;  %v134_v26 = vrot.slane %v471_v17, 3  ;;  %v163_v27 = vrot.slane %v436_v10, 3  ;;  %v342_v28 = vld [vmem:[%s591_s1 + $0x28] sm:$0xff]  ;;  %69 = vmatpush.msra.mxu0 %v22_v23  ;;  %v341_v34 = vld [vmem:[%s591_s1 + $0x20] sm:$0xff] }
   0x9   :  { %194 = vmatpush.msra.mxu3 %v351_v22  ;;  %v21_v29 = vld [vmem:[%s591_s1 + $0x8] sm:$0xff]  ;;  %v124_v30 = vsel %vm33_vm0, %v123_v19, %v122_v18  ;;  %v164_v31 = vrot.slane %v441_v11, 2  ;;  %v166_v32 = vrot.slane %v446_v12, 1  ;;  %v169_v33 = vrot.slane %v456_v14, 7  ;;  %111 = vmatpush.msra.mxu1 %v342_v28  ;;  %v20_v39 = vld [vmem:[%s591_s1] sm:$0xff] }
   0xa   :  { %v125_v35 = vsel %vm36_vm1, %v446_v12, %v124_v30  ;;  %v171_v36 = vrot.slane %v461_v15, 6  ;;  %v173_v37 = vrot.slane %v466_v16, 5  ;;  %v175_v38 = vrot.slane %v471_v17, 4 }
   0xb   :  { %7 = vsyncpa [#allocation3], 0  ;;  %v127_v40 = vsel %vm39_vm2, %v126_v20, %v125_v35  ;;  %v165_v41 = vsel %vm33_vm0, %v164_v31, %v163_v27  ;;  %70 = vmatpush.msra.mxu0 %v21_v29  ;;  %112 = vmatpush.msra.mxu1 %v341_v34  ;;  %v81_v42 = vrot.slane %v436_v10, 1  ;;  %v83_v43 = vrot.slane %v446_v12, 7  ;;  %s385_s1 = smov [#allocation2]   ;;  %s328_s3 = sshll.u32 %s592_s2, 4  ;;  %s329_s3 = int_to_ptr.hbm [resolvable:$true] %s328_s3 }
   0xc   :  { %v129_v44 = vsel %vm42_vm3, %v128_v21, %v127_v40  ;;  %v167_v45 = vsel %vm36_vm1, %v166_v32, %v165_v41  ;;  %v85_v46 = vrot.slane %v451_v13, 6  ;;  %v87_v47 = vrot.slane %v456_v14, 5  ;;  %s326_s28 = sshll.u32 %s385_s1, 4  ;;  %s386_s2 = smov 64   ;;  %s327_s28 = int_to_ptr.vmem [resolvable:$true] %s326_s28 }
   0xd   :  { %v131_v48 = vsel %vm45_vm4, %v130_v24, %v129_v44  ;;  %v168_v49 = vsel %vm39_vm2, %v451_v13, %v167_v45  ;;  %v82_v50 = vsel %vm33_vm0, %v441_v11, %v81_v42  ;;  %v89_v51 = vrot.slane %v461_v15, 4  ;;  %71 = vmatpush.msra.mxu0 %v20_v39  ;;  %s387_s4 = smov 4  }
   0xe   :  { %v133_v52 = vsel %vm48_vm5, %v132_v25, %v131_v48  ;;  %v170_v53 = vsel %vm42_vm3, %v169_v33, %v168_v49  ;;  %v84_v54 = vsel %vm36_vm1, %v83_v43, %v82_v50  ;;  %v91_v55 = vrot.slane %v466_v16, 3 }
   0xf   :  { %v135_v56 = vsel %vm51_vm6, %v134_v26, %v133_v52  ;;  %v172_v57 = vsel %vm45_vm4, %v171_v36, %v170_v53  ;;  %v86_v58 = vsel %vm39_vm2, %v85_v46, %v84_v54  ;;  %v93_v59 = vrot.slane %v471_v17, 2 }
  0x10   :  { %350 = vmatmul.msk.f32.vlgmr.msra.gmra.mxu2 %vm53_vm7, %v135_v56  ;;  %v174_v60 = vsel %vm48_vm5, %v173_v37, %v172_v57  ;;  %v88_v61 = vsel %vm42_vm3, %v87_v47, %v86_v58  ;;  %v32_v62 = vrot.slane %v441_v11, 7  ;;  %v35_v63 = vrot.slane %v446_v12, 6 }
  0x11   :  { %v176_v0 = vsel %vm51_vm6, %v175_v38, %v174_v60  ;;  %v90_v1 = vsel %vm45_vm4, %v89_v51, %v88_v61  ;;  %v38_v2 = vrot.slane %v451_v13, 5  ;;  %v41_v3 = vrot.slane %v456_v14, 4 }
  0x12   :  { %355 = vmatmul.msk.f32.vlgmr.msra.gmra.mxu3 %vm53_vm7, %v176_v0  ;;  %v92_v4 = vsel %vm48_vm5, %v91_v55, %v90_v1  ;;  %v34_v5 = vsel %vm33_vm0, %v32_v62, %v436_v10  ;;  %v44_v6 = vrot.slane %v461_v15, 3  ;;  %v47_v9 = vrot.slane %v466_v16, 2 }
  0x13   :  { %v94_v7 = vsel %vm51_vm6, %v93_v59, %v92_v4  ;;  %v37_v8 = vsel %vm36_vm1, %v35_v63, %v34_v5  ;;  %v50_v12 = vrot.slane %v471_v17, 1  ;;  %vm286_vm8 = vcmask 1040384  }
  0x14   :  { %345 = vmatmul.msk.f32.vlgmr.msra.gmra.mxu1 %vm53_vm7, %v94_v7  ;;  %v40_v11 = vsel %vm39_vm2, %v38_v2, %v37_v8  ;;  %vm295_vm9 = vcmask 1041408   ;;  %vm304_vm10 = vcmask 1042432   ;;  %vm313_vm11 = vcmask 125952  }
  0x15   :  { %v43_v13 = vsel %vm42_vm3, %v41_v3, %v40_v11 }
  0x16   :  { %v46_v14 = vsel %vm45_vm4, %v44_v6, %v43_v13 }
  0x17   :  { %v49_v10 = vsel %vm48_vm5, %v47_v9, %v46_v14 }
  0x18   :  { %v52_v15 = vsel %vm51_vm6, %v50_v12, %v49_v10 }
  0x19   :  { %340 = vmatmul.msk.f32.vlgmr.msra.gmra.mxu0 %vm53_vm7, %v52_v15 }
  0x91   :  { %v114_v18 = vpop.f32.mrf.mxu1 }
  0x92   :  { %v215_v19 = vrot.slane %v114_v18, 1  ;;  %v216_v20 = vrot.slane %v114_v18, 2  ;;  %v217_v16 = vrot.slane %v114_v18, 3  ;;  %v218_v21 = vrot.slane %v114_v18, 4 }
  0x93   :  { %v219_v22 = vrot.slane %v114_v18, 5  ;;  %v220_v23 = vrot.slane %v114_v18, 6  ;;  %v221_v24 = vrot.slane %v114_v18, 7  ;;  %v155_v25 = vpop.f32.mrf.mxu2  ;;  %v238_v17 = vperm.slane %v114_v18, 0 }
  0x94   :  { %v239_v26 = vperm.slane %v215_v19, 0  ;;  %v240_v27 = vperm.slane %v216_v20, 0  ;;  %v241_v28 = vperm.slane %v217_v16, 0  ;;  %v223_v29 = vrot.slane %v155_v25, 1 }
  0x95   :  { %v242_v30 = vperm.slane %v218_v21, 0  ;;  %v243_v31 = vperm.slane %v219_v22, 0  ;;  %v224_v32 = vrot.slane %v155_v25, 2  ;;  %v225_v33 = vrot.slane %v155_v25, 3  ;;  %v196_v59 = vpop.f32.mrf.mxu3 }
  0x96   :  { %v73_v34 = vpop.f32.mrf.mxu0  ;;  %v244_v35 = vperm.slane %v220_v23, 0  ;;  %v245_v36 = vperm.slane %v221_v24, 0  ;;  %v226_v37 = vrot.slane %v155_v25, 4  ;;  %v227_v38 = vrot.slane %v155_v25, 5 }
  0x97   :  { %v228_v39 = vrot.slane %v155_v25, 6  ;;  %v229_v40 = vrot.slane %v155_v25, 7  ;;  %v254_v41 = vperm.slane %v155_v25, 0  ;;  %v255_v42 = vperm.slane %v223_v29, 0 }
  0x98   :  { %v256_v43 = vperm.slane %v224_v32, 0  ;;  %v257_v44 = vperm.slane %v225_v33, 0  ;;  %v200_v45 = vrot.slane %v73_v34, 1  ;;  %v201_v46 = vrot.slane %v73_v34, 2 }
  0x99   :  { %v202_v47 = vrot.slane %v73_v34, 3  ;;  %v203_v48 = vrot.slane %v73_v34, 4  ;;  %v204_v49 = vrot.slane %v73_v34, 5  ;;  %v205_v50 = vrot.slane %v73_v34, 6 }
  0x9a   :  { %v206_v51 = vrot.slane %v73_v34, 7  ;;  %v287_v52 = vsel %vm286_vm8, %v73_v34, %v238_v17  ;;  %v288_v53 = vsel %vm286_vm8, %v200_v45, %v239_v26  ;;  %v289_v54 = vsel %vm286_vm8, %v201_v46, %v240_v27 }
  0x9b   :  { %v258_v55 = vperm.slane %v226_v37, 0  ;;  %v259_v56 = vperm.slane %v227_v38, 0  ;;  %v260_v57 = vperm.slane %v228_v39, 0  ;;  %v290_v58 = vsel %vm286_vm8, %v202_v47, %v241_v28 }
  0x9c   :  { %v261_v60 = vperm.slane %v229_v40, 0  ;;  %v291_v61 = vsel %vm286_vm8, %v203_v48, %v242_v30  ;;  %v292_v62 = vsel %vm286_vm8, %v204_v49, %v243_v31  ;;  %v293_v63 = vsel %vm286_vm8, %v205_v50, %v244_v35 }
  0x9d   :  { %v294_v0 = vsel %vm286_vm8, %v206_v51, %v245_v36  ;;  %v296_v1 = vsel %vm295_vm9, %v287_v52, %v254_v41  ;;  %v297_v2 = vsel %vm295_vm9, %v288_v53, %v255_v42  ;;  %v298_v3 = vsel %vm295_vm9, %v289_v54, %v256_v43 }
  0x9e   :  { %v299_v4 = vsel %vm295_vm9, %v290_v58, %v257_v44  ;;  %v231_v5 = vrot.slane %v196_v59, 1  ;;  %v232_v6 = vrot.slane %v196_v59, 2  ;;  %v233_v7 = vrot.slane %v196_v59, 3 }
  0x9f   :  { %v234_v8 = vrot.slane %v196_v59, 4  ;;  %v235_v9 = vrot.slane %v196_v59, 5  ;;  %v236_v11 = vrot.slane %v196_v59, 6  ;;  %v237_v12 = vrot.slane %v196_v59, 7 }
  0xa0   :  { %v270_v13 = vperm.slane %v196_v59, 0  ;;  %v271_v14 = vperm.slane %v231_v5, 0  ;;  %v272_v10 = vperm.slane %v232_v6, 0  ;;  %v273_v15 = vperm.slane %v233_v7, 0 }
  0xa1   :  { %v300_v18 = vsel %vm295_vm9, %v291_v61, %v258_v55  ;;  %v301_v19 = vsel %vm295_vm9, %v292_v62, %v259_v56  ;;  %v274_v20 = vperm.slane %v234_v8, 0  ;;  %v275_v16 = vperm.slane %v235_v9, 0 }
  0xa2   :  { %v276_v21 = vperm.slane %v236_v11, 0  ;;  %v305_v22 = vsel %vm304_vm10, %v296_v1, %v270_v13  ;;  %v306_v23 = vsel %vm304_vm10, %v297_v2, %v271_v14  ;;  %v307_v24 = vsel %vm304_vm10, %v298_v3, %v272_v10 }
  0xa3   :  { %v302_v25 = vsel %vm295_vm9, %v293_v63, %v260_v57  ;;  %v277_v17 = vperm.slane %v237_v12, 0  ;;  %v308_v26 = vsel %vm304_vm10, %v299_v4, %v273_v15  ;;  %314 = vst.msk [vmem:[#allocation2] sm:$0xf] %vm313_vm11, %v305_v22  ;;  %v303_v27 = vsel %vm295_vm9, %v294_v0, %v261_v60 }
  0xa4   :  { %v309_v28 = vsel %vm304_vm10, %v300_v18, %v274_v20  ;;  %315 = vst.msk [vmem:[#allocation2 + $0x4] sm:$0xf] %vm313_vm11, %v306_v23  ;;  %v310_v29 = vsel %vm304_vm10, %v301_v19, %v275_v16  ;;  %v311_v30 = vsel %vm304_vm10, %v302_v25, %v276_v21 }
  0xa5   :  { %316 = vst.msk [vmem:[#allocation2 + $0x8] sm:$0xf] %vm313_vm11, %v307_v24  ;;  %v312_v31 = vsel %vm304_vm10, %v303_v27, %v277_v17 }
  0xa6   :  { %317 = vst.msk [vmem:[#allocation2 + $0xc] sm:$0xf] %vm313_vm11, %v308_v26 }
  0xa7   :  { %318 = vst.msk [vmem:[#allocation2 + $0x10] sm:$0xf] %vm313_vm11, %v309_v28 }
  0xa8   :  { %319 = vst.msk [vmem:[#allocation2 + $0x14] sm:$0xf] %vm313_vm11, %v310_v29 }
  0xa9   :  { %320 = vst.msk [vmem:[#allocation2 + $0x18] sm:$0xf] %vm313_vm11, %v311_v30 }
  0xaa   :  { %321 = vst.msk [vmem:[#allocation2 + $0x1c] sm:$0xf] %vm313_vm11, %v312_v31 }
  0xab   :  { %334 = dma.vmem_to_hbm [thread:$0]  %s327_s28, 512, %s329_s3, [#allocation3], %s386_s2, %s386_s2, %s387_s4  }
  0xac   :  { %383 = dma.done.wait [#allocation3], 512  }
  0xad   :  { %384 = vsyncadd [#allocation3], 4294966784 }
  0xae   :  { %339 = vsyncpa [#allocation3], 1 }

</bundles_post_ra>
